<compile_context>
chip_gen: v7x
topology: tpu7x:2x2x1
jax: 0.10.0
libtpu: 0.0.40
codegen_flags: <defaults>
</compile_context>

<pallas_src>
import functools
import math

import numpy as np
import jax
import jax.numpy as jnp
from jax.experimental import pallas as pl
from jax.experimental.pallas import tpu as pltpu


# ---------------------------------------------------------------------------
# Host-side (trace-time) construction of the per-axis interpolation matrix.
# Matches PyTorch's coordinate conventions exactly.
# ---------------------------------------------------------------------------
def _interp_matrix(in_size, out_size, mode, align_corners):
    if mode == "nearest":
        # PyTorch legacy 'nearest': src = floor(dst * in/out)
        idx = np.floor(np.arange(out_size) * (in_size / out_size)).astype(np.int64)
        idx = np.clip(idx, 0, in_size - 1)
        m = np.zeros((out_size, in_size), np.float32)
        m[np.arange(out_size), idx] = 1.0
        return m
    if mode in ("linear", "bilinear"):
        if align_corners:
            if out_size == 1:
                src = np.zeros((1,), np.float64)
            else:
                src = np.arange(out_size, dtype=np.float64) * (in_size - 1) / (out_size - 1)
        else:
            src = (np.arange(out_size, dtype=np.float64) + 0.5) * (in_size / out_size) - 0.5
            src = np.maximum(src, 0.0)
        i0 = np.clip(np.floor(src).astype(np.int64), 0, in_size - 1)
        i1 = np.minimum(i0 + 1, in_size - 1)
        w1 = (src - i0).astype(np.float32)
        w0 = (1.0 - w1).astype(np.float32)
        m = np.zeros((out_size, in_size), np.float32)
        np.add.at(m, (np.arange(out_size), i0), w0)   # add.at: i0 == i1 at clamped edges
        np.add.at(m, (np.arange(out_size), i1), w1)
        return m
    # TODO(synk): bicubic / trilinear / area interpolation modes not implemented.
    raise NotImplementedError(f"mode={mode!r}")


# ---------------------------------------------------------------------------
# Fused Pallas kernel: both separable passes in one grid step, intermediate in
# VMEM/vregs.  Blocks are flat, sublane-dense 2-D slabs:
#   x_ref   (bc_tile*H_in,  W_in)
#   ah_ref  (H_out, H_in)          height interpolation matrix
#   awt_ref (W_in,  W_out)         width interpolation matrix (pre-transposed)
#   o_ref   (bc_tile*H_out, W_out)
# ---------------------------------------------------------------------------
def _interp_kernel(x_ref, ah_ref, awt_ref, o_ref, *, bc_tile, height_first,
                   compute_dtype):
    h_out, h_in = ah_ref.shape
    w_in, w_out = awt_ref.shape

    x = x_ref[...].astype(compute_dtype)      # (bc*H_in, W_in)
    ah = ah_ref[...]                           # (H_out, H_in)
    awt = awt_ref[...]                         # (W_in, W_out)

    # Width pass: one flat 2-D MXU matmul, M = bc_tile * H (>= 128 easily).
    # Height pass: contracts the *middle* axis of the (bc, H, W) slab, which has
    # no flat 2-D view, so it stays a batched matmul with the tiny (H_out, H_in)
    # matrix shared across the batch.  The broadcast is bounded by bc_tile
    # (wrapper VMEM budget) and is the only broadcast temporary in the kernel.
    # TODO(synk): if Mosaic reliably lowers the non-batched (bc,H,W)x(H_out,H)
    # dot_general, contract the rank-2 matrix directly and drop the broadcast.
    ah_b = jnp.broadcast_to(ah[None], (bc_tile, h_out, h_in))

    if height_first:
        x3 = x.reshape(bc_tile, h_in, w_in)
        t = jnp.einsum("boh,bhw->bow", ah_b, x3,
                       preferred_element_type=jnp.float32)          # (bc, H_out, W_in)
        t2 = t.reshape(bc_tile * h_out, w_in).astype(compute_dtype)
        y = jnp.dot(t2, awt, preferred_element_type=jnp.float32)    # (bc*H_out, W_out)
    else:
        t2 = jnp.dot(x, awt, preferred_element_type=jnp.float32)    # (bc*H_in, W_out)
        t3 = t2.reshape(bc_tile, h_in, w_out).astype(compute_dtype)
        y3 = jnp.einsum("boh,bhw->bow", ah_b, t3,
                        preferred_element_type=jnp.float32)         # (bc, H_out, W_out)
        y = y3.reshape(bc_tile * h_out, w_out)

    o_ref[...] = y.astype(o_ref.dtype)


def pallas_interpolate(x, *, output_size, mode, align_corners):
    """F.interpolate(x, size=output_size, mode=mode, align_corners=align_corners)
    for 4-D NCHW input, modes 'nearest' and 'bilinear'/'linear'."""
    B, C, H_in, W_in = x.shape
    H_out, W_out = output_size
    BC = B * C

    # bf16 inputs keep bf16 MXU operands (bf16-native on v6e/v7x, halves DMA
    # bytes); everything else computes in f32.  Accumulation is always f32.
    compute_dtype = jnp.bfloat16 if x.dtype == jnp.bfloat16 else jnp.float32

    a_h = jnp.asarray(_interp_matrix(H_in, H_out, mode, align_corners),
                      dtype=compute_dtype)                           # (H_out, H_in)
    a_wt = jnp.asarray(_interp_matrix(W_in, W_out, mode, align_corners).T,
                       dtype=compute_dtype)                          # (W_in, W_out)

    # Static pass-order choice: pick the order with fewer MXU flops (also the
    # smaller VMEM-resident intermediate).  Shapes are static -> free.
    cost_hf = H_out * W_in * (H_in + W_out)      # height pass first
    cost_wf = H_in * W_out * (W_in + H_out)      # width pass first
    height_first = cost_hf <= cost_wf
    inter_elems = H_out * W_in if height_first else H_in * W_out

    itemsize = jnp.dtype(x.dtype).itemsize
    per_bc_io = itemsize * (H_in * W_in + H_out * W_out)

    # --- bc_tile selection ---------------------------------------------------
    # ~1 MiB of I/O per block: big enough to amortize the ~0.35 us per-step
    # overhead and keep DMA overlapped with compute, small enough that the
    # double-buffered footprint stays well below v5e's 16 MiB scoped-VMEM
    # default (32 MiB scoped on v6e/v7x, only 64 MiB physical on v7x).
    target_block_bytes = 1 << 20
    bc_tile = max(1, target_block_bytes // per_bc_io)
    # v7x megacore: guarantee >= 2 grid steps whenever there is enough work so
    # the "parallel" axis actually shards across both TensorCores.
    bc_tile = min(bc_tile, max(1, pl.cdiv(BC, 2)))
    # Flat (bc*H, W) blocks need their sublane dim divisible by 8 when the grid
    # has more than one step; `m` is the smallest bc multiple achieving that for
    # both H_in and H_out.
    m = math.lcm(8 // math.gcd(8, H_in), 8 // math.gcd(8, H_out))
    bc_tile = max(m, (bc_tile // m) * m)

    BC_pad = pl.cdiv(BC, bc_tile) * bc_tile
    grid = (BC_pad // bc_tile,)

    # Pad the fused batch*channel axis with zeros instead of hunting for a
    # divisor of BC (keeps blocks large for prime/awkward BC); padded rows are
    # sliced off after the call.
    x_bc = x.reshape(BC, H_in, W_in)
    if BC_pad != BC:
        x_bc = jnp.pad(x_bc, ((0, BC_pad - BC), (0, 0), (0, 0)))
    x_flat = x_bc.reshape(BC_pad * H_in, W_in)       # sublane-dense input slab

    # --- VMEM budget / scheduler hints ----------------------------------------
    mat_bytes = jnp.dtype(compute_dtype).itemsize * (H_out * H_in + W_in * W_out)
    block_in = bc_tile * H_in * W_in * itemsize
    block_out = bc_tile * H_out * W_out * itemsize
    # f32 kernel temporaries: cast input, intermediate, output, broadcast A_h.
    temps = 4 * bc_tile * (H_in * W_in + inter_elems + H_out * W_out + H_out * H_in)
    footprint = 2 * (block_in + block_out) + 2 * mat_bytes + temps
    vmem_limit = int(min(64 << 20, max(2 * footprint, 16 << 20)))

    flops = 2 * BC_pad * min(cost_hf, cost_wf)
    bytes_accessed = int(BC_pad * (H_in * W_in + H_out * W_out) * itemsize + mat_bytes)

    kernel = functools.partial(
        _interp_kernel, bc_tile=bc_tile, height_first=height_first,
        compute_dtype=compute_dtype)

    out_flat = pl.pallas_call(
        kernel,
        out_shape=jax.ShapeDtypeStruct((BC_pad * H_out, W_out), x.dtype),
        grid_spec=pltpu.PrefetchScalarGridSpec(
            num_scalar_prefetch=0,
            grid=grid,
            in_specs=[
                pl.BlockSpec((bc_tile * H_in, W_in), lambda i: (i, 0)),
                # Constant block index -> the pipeline keeps the tiny matrices
                # resident across grid steps instead of re-DMAing them.
                pl.BlockSpec((H_out, H_in), lambda i: (0, 0)),
                pl.BlockSpec((W_in, W_out), lambda i: (0, 0)),
            ],
            out_specs=pl.BlockSpec((bc_tile * H_out, W_out), lambda i: (i, 0)),
        ),
        compiler_params=pltpu.CompilerParams(
            dimension_semantics=("parallel",),       # shard BC across TCs on v7x
            vmem_limit_bytes=vmem_limit),
        cost_estimate=pl.CostEstimate(
            flops=flops, transcendentals=0, bytes_accessed=bytes_accessed),
    )(x_flat, a_h, a_wt)

    # TODO(synk): for large spatial sizes (H_in/W_in >= ~256) a gather-and-lerp
    # path (two pl.ds row loads + VPU FMA per output row) would avoid the dense
    # GEMM's extra flops; unnecessary while memory-bound at these sizes.
    out = out_flat.reshape(BC_pad, H_out, W_out)[:BC]
    return out.reshape(B, C, H_out, W_out)


# ---------------------------------------------------------------------------
# Pure-JAX reference (direct gather + lerp, independent of the GEMM path).
# ---------------------------------------------------------------------------
def interpolate_reference(x, output_size, mode, align_corners):
    B, C, H, W = x.shape
    OH, OW = output_size
    if mode == "nearest":
        hi = np.clip(np.floor(np.arange(OH) * (H / OH)).astype(np.int32), 0, H - 1)
        wi = np.clip(np.floor(np.arange(OW) * (W / OW)).astype(np.int32), 0, W - 1)
        return x[:, :, hi, :][:, :, :, wi]

    def coords(in_size, out_size):
        if align_corners:
            if out_size == 1:
                src = np.zeros((1,), np.float64)
            else:
                src = np.arange(out_size, dtype=np.float64) * (in_size - 1) / (out_size - 1)
        else:
            src = (np.arange(out_size, dtype=np.float64) + 0.5) * (in_size / out_size) - 0.5
            src = np.maximum(src, 0.0)
        i0 = np.clip(np.floor(src).astype(np.int32), 0, in_size - 1)
        i1 = np.minimum(i0 + 1, in_size - 1)
        w1 = (src - i0).astype(np.float32)
        return jnp.asarray(i0), jnp.asarray(i1), jnp.asarray(w1)

    h0, h1, wh = coords(H, OH)
    w0, w1, ww = coords(W, OW)
    top = (x[:, :, h0, :] * (1.0 - wh)[None, None, :, None]
           + x[:, :, h1, :] * wh[None, None, :, None])
    return top[:, :, :, w0] * (1.0 - ww) + top[:, :, :, w1] * ww


if __name__ == "__main__":
    key = jax.random.PRNGKey(0)
    x = jax.random.normal(key, (2, 4, 16, 16), jnp.float32)   # NCHW

    cases = [
        ((32, 32), "bilinear", False),   # 2x upsample, half-pixel centers
        ((23, 31), "bilinear", True),    # non-integer scale, align_corners=True
        ((32, 48), "nearest", False),    # nearest neighbour
    ]
    for output_size, mode, align_corners in cases:
        fn = jax.jit(functools.partial(
            pallas_interpolate, output_size=output_size, mode=mode,
            align_corners=align_corners))
        y = jax.block_until_ready(fn(x))
        assert y.shape == (2, 4) + output_size
        y_ref = interpolate_reference(x, output_size, mode, align_corners)
        np.testing.assert_allclose(np.asarray(y), np.asarray(y_ref),
                                   rtol=1e-5, atol=1e-5)
    print("KERNEL_OK")
</pallas_src>

<mosaic_0001>
module attributes {stable_mosaic.version = 11 : i64} {
  func.func @_interp_kernel(%arg0: i32, %arg1: memref<64x16xf32, #tpu.memory_space<vmem>>, %arg2: memref<32x16xf32, #tpu.memory_space<vmem>>, %arg3: memref<16x32xf32, #tpu.memory_space<vmem>>, %arg4: memref<128x32xf32, #tpu.memory_space<vmem>>) attributes {dimension_semantics = [#tpu.dimension_semantics<parallel>], iteration_bounds = array<i64: 2>, scalar_prefetch = 0 : i64, scratch_operands = 0 : i64, tpu.core_type = #tpu.core_type<tc>, window_params = [{transform_indices = @transform_0, window_bounds = array<i64: 64, 16>}, {pipeline_mode = #tpu.pipeline_mode<synchronous>, transform_indices = @transform_1, window_bounds = array<i64: 32, 16>}, {pipeline_mode = #tpu.pipeline_mode<synchronous>, transform_indices = @transform_2, window_bounds = array<i64: 16, 32>}, {transform_indices = @transform_3, window_bounds = array<i64: 128, 32>}]} {
    %c0 = arith.constant 0 : index
    %c0_0 = arith.constant 0 : index
    %0 = vector.load %arg1[%c0, %c0_0] : memref<64x16xf32, #tpu.memory_space<vmem>>, vector<64x16xf32>
    %c0_1 = arith.constant 0 : index
    %c0_2 = arith.constant 0 : index
    %1 = vector.load %arg2[%c0_1, %c0_2] : memref<32x16xf32, #tpu.memory_space<vmem>>, vector<32x16xf32>
    %c0_3 = arith.constant 0 : index
    %c0_4 = arith.constant 0 : index
    %2 = vector.load %arg3[%c0_3, %c0_4] : memref<16x32xf32, #tpu.memory_space<vmem>>, vector<16x32xf32>
    %3 = vector.shape_cast %1 : vector<32x16xf32> to vector<1x32x16xf32>
    %4 = vector.shape_cast %3 : vector<1x32x16xf32> to vector<1x32x16xf32>
    %5 = vector.broadcast %4 : vector<1x32x16xf32> to vector<4x32x16xf32>
    %6 = vector.shape_cast %0 : vector<64x16xf32> to vector<4x16x16xf32>
    "tpu.trace_start"() <{level = 10 : i32, message = "boh,bhw->bow"}> : () -> ()
    %cst = arith.constant dense<0.000000e+00> : vector<4x32x16xf32>
    %7 = tpu.matmul %5, %6, %cst {dimension_numbers = #tpu.dot_dimension_numbers<[2], [1], [1], [2], [0, 0, 0, 1, 1, 2], [0], [0]>} : vector<4x32x16xf32>, vector<4x16x16xf32>, vector<4x32x16xf32> -> vector<4x32x16xf32>
    "tpu.trace_stop"() : () -> ()
    %8 = vector.shape_cast %7 : vector<4x32x16xf32> to vector<128x16xf32>
    %cst_5 = arith.constant dense<0.000000e+00> : vector<128x32xf32>
    %9 = tpu.matmul %8, %2, %cst_5 {dimension_numbers = #tpu.dot_dimension_numbers<[1], [0], [0], [1], [0, 0, 1, 1], [], []>} : vector<128x16xf32>, vector<16x32xf32>, vector<128x32xf32> -> vector<128x32xf32>
    %c0_6 = arith.constant 0 : index
    %c0_7 = arith.constant 0 : index
    %10 = vector.load %arg4[%c0_6, %c0_7] : memref<128x32xf32, #tpu.memory_space<vmem>>, vector<128x32xf32>
    tpu.vector_store %arg4[%c0_6, %c0_7], %9 {strides = array<i32>} : memref<128x32xf32, #tpu.memory_space<vmem>>, vector<128x32xf32>,
    return
  }
  func.func @transform_0(%arg0: i32) -> (i32, i32) {
    %c0_i32 = arith.constant 0 : i32
    %c0_i32_0 = arith.constant 0 : i32
    return %arg0, %c0_i32 : i32, i32
  }
  func.func @transform_1(%arg0: i32) -> (i32, i32) {
    %c0_i32 = arith.constant 0 : i32
    %c0_i32_0 = arith.constant 0 : i32
    %c0_i32_1 = arith.constant 0 : i32
    return %c0_i32, %c0_i32_0 : i32, i32
  }
  func.func @transform_2(%arg0: i32) -> (i32, i32) {
    %c0_i32 = arith.constant 0 : i32
    %c0_i32_0 = arith.constant 0 : i32
    %c0_i32_1 = arith.constant 0 : i32
    return %c0_i32, %c0_i32_0 : i32, i32
  }
  func.func @transform_3(%arg0: i32) -> (i32, i32) {
    %c0_i32 = arith.constant 0 : i32
    %c0_i32_0 = arith.constant 0 : i32
    return %arg0, %c0_i32 : i32, i32
  }
}

</mosaic_0001>

<bundles_post_ra>
// kernel: pallas_interpolate.1
= control target key start
LH: loop header
LB: loop body
LE: loop exit
PB: predicated region body
PF: predicated region fallthrough
CT: control target
= control target key end

     0   :  { %8 = vsyncpa [#allocation3], 0  ;;  %s1655_s0 = inlined_call_operand.hbm [shape: f32[128,16], index: 0, kind: input, shape index: {}]   ;;  %s1656_s1 = inlined_call_operand.hbm [shape: f32[32,16], index: 1, kind: input, shape index: {}]   ;;  %s1657_s2 = inlined_call_operand.hbm [shape: f32[16,32], index: 2, kind: input, shape index: {}]   ;;  %s1658_s3 = inlined_call_operand.hbm [shape: f32[256,32], index: 3, kind: output, shape index: {}]  }
   0x1   :  { %10 = vsyncpa [#allocation3 + $0x1], 0 }
   0x2   :  { %11 = vsyncpa [#allocation6], 0 }
   0x3   :  { %12 = vsyncpa [#allocation4], 0 }
   0x4   :  { %14 = vsyncpa [#allocation4 + $0x1], 0  ;;  %s1344_s12 = smov 0   ;;  %s1346_s13 = smov 0  }
   0x5   :  { %s1348_s14 = smov 0   ;;  %s1350_s15 = smov 0  }
   0x6 LB: > { %s1365_s16 = sadd.s32 4294967295, %s1314_s15   ;;  %s903_s17 = sadd.s32 4294967294, %s1314_s15   ;;  %s1314_s15 = sphi %s1350_s15, %s1678_s15   ;;  %s1310_s14 = sphi %s1348_s14, %s1677_s14   ;;  %s1306_s13 = sphi %s1346_s13, %s1676_s13   ;;  %s1302_s12 = sphi %s1344_s12, %s1675_s12  }
   0x7   : > { %p40_p0 = scmp.ne.s32.totalorder %s1306_s13, %s1302_s12  ;;  %p1659_p1 = scmp.eq.s32.totalorder %s1365_s16, 0 }
   0x8   : > { %p112_p3 = scmp.eq.s32.totalorder %s903_s17, 1  ;;  %p904_p5 = scmp.ge.s32.totalorder %s1314_s15, 1 }
   0x9   : > { %p1374_p4 = por %p1659_p1, %p40_p0  ;;  %p119_p7 = scmp.lt.s32.totalorder %s1314_s15, 3 }
   0xa   : > { %p1379_p6 = por %p112_p3, %p40_p0  ;;  %s1316_s21 = smov [#allocation5]  }
   0xb   : > { %s1662_s18 = scalar_select %p1374_p4, 1, 0 }
   0xc   : > { %s1663_s19 = scalar_select %p1379_p6, 1, 0 }
   0xd   : > { %p1384_p8 = pnand %p904_p5, %p119_p7  ;;  %s131_s22 = sshll.u32 %s1316_s21, 4  ;;  %s1388_s22 = int_to_ptr.vmem [resolvable:$true] %s131_s22 }
   0xe   : > { %s1317_s24 = smov [#allocation7]   ;;  %s1158_s28 = scalar_lea.hbm %s1656_s1, 512 }
   0xf   : > { %p1099_p9 = pneg %p1384_p8  ;;  %s144_s25 = sshll.u32 %s1317_s24, 4  ;;  %s1399_s25 = int_to_ptr.vmem [resolvable:$true] %s144_s25 }
  0x10   : > { %p1159_p12 = scmp.ne.s32.totalorder %s1656_s1, %s1158_s28  ;;  %p1165_p5 = scmp.lt.u32.totalorder %s1158_s28, %s1656_s1 }
  0x11   : > { %p1395_p11 = pnand %p1099_p9, %p1659_p1 }
  0x13   : > { %p1160_p13 = pneg %p1395_p11 }
  0x15   : > { %p1161_p0 = pnand %p1160_p13, %p1159_p12 }
  0x17   : > { %p1162_p3 = pneg %p1161_p0 }
  0x19   : > { %p1167_p7 = pnand %p1165_p5, %p1162_p3 }
  0x1b   : > { %1170 = shalt.err (!%p1167_p7)
}
  0x1c   : > { %s1171_s6 = scalar_lea.vmem %s1388_s22, 512  ;;  %p1179_p2 = scmp.lt.s32.totalorder %s1388_s22, %s1388_s22 }
  0x1d   : > { %p1172_p9 = scmp.ne.s32.totalorder %s1388_s22, %s1171_s6  ;;  %p1180_p12 = scmp.lt.s32.totalorder %s1171_s6, %s1171_s6 }
  0x1f   : > { %p1174_p10 = pnand %p1172_p9, %p1160_p13  ;;  %p1181_p0 = por %p1180_p12, %p1179_p2 }
  0x21   : > { %p1175_p1 = pneg %p1174_p10 }
  0x23   : > { %p1182_p6 = pnand %p1181_p0, %p1175_p1 }
  0x25   : > { %1185 = shalt.err (!%p1182_p6)
}
  0x26   : > { %s1318_s7 = smov 128   ;;  %s1319_s8 = smov 8  }
  0x27   : > { %1102 = dma.hbm_to_vmem [thread:$0]  (!%p1395_p11), %s1656_s1, 512, %s1388_s22, [#allocation6], %s1318_s7, %s1318_s7, %s1319_s8  }
  0x28   : > { %s1186_s21 = scalar_lea.hbm %s1657_s2, 256 }
  0x29   : > { %p1187_p1 = scmp.ne.s32.totalorder %s1657_s2, %s1186_s21  ;;  %p1193_p10 = scmp.lt.u32.totalorder %s1186_s21, %s1657_s2 }
  0x2b   : > { %p1189_p2 = pnand %p1187_p1, %p1160_p13 }
  0x2d   : > { %p1190_p6 = pneg %p1189_p2 }
  0x2f   : > { %p1195_p3 = pnand %p1193_p10, %p1190_p6 }
  0x31   : > { %1198 = shalt.err (!%p1195_p3)
}
  0x32   : > { %s1199_s22 = scalar_lea.vmem %s1399_s25, 256  ;;  %p1207_p12 = scmp.lt.s32.totalorder %s1399_s25, %s1399_s25 }
  0x33   : > { %p1200_p5 = scmp.ne.s32.totalorder %s1399_s25, %s1199_s22  ;;  %p1208_p0 = scmp.lt.s32.totalorder %s1199_s22, %s1199_s22 }
  0x35   : > { %p1202_p7 = pnand %p1200_p5, %p1160_p13  ;;  %p1209_p1 = por %p1208_p0, %p1207_p12 }
  0x37   : > { %p1203_p9 = pneg %p1202_p7 }
  0x39   : > { %p1210_p2 = pnand %p1209_p1, %p1203_p9 }
  0x3b   : > { %1213 = shalt.err (!%p1210_p2)
}
  0x3c   : > { %1105 = dma.hbm_to_vmem [thread:$0]  (!%p1395_p11), %s1657_s2, 256, %s1399_s25, [#allocation6], %s1318_s7, %s1318_s7, %s1319_s8  }
  0x3d   : > { %s1460_s23 = sadd.s32 1, %s1314_s15   ;;  %s27_s4 = sadd.s32 1, %s1310_s14 }
  0x3e   : > { %s24_s5 = ssub.s32 %s1314_s15, %s1460_s23  ;;  %p34_p13 = scmp.ne.s32.totalorder %s1310_s14, %s1306_s13 }
  0x3f   : > { %p25_p6 = scmp.eq.s32.totalorder %s24_s5, 0  ;;  %p35_p10 = scmp.eq.s32.totalorder %s1314_s15, 0 }
  0x40   : > { %p1666_p3 = scmp.eq.s32.totalorder %s1365_s16, 1  ;;  %p1116_p7 = scmp.lt.s32.totalorder %s1314_s15, 2 }
  0x41   : > { %s1476_s9 = scalar_select %p25_p6, %s1310_s14, %s27_s4  }
  0x42   : > { %p1470_p5 = por %p1666_p3, %p34_p13  ;;  %p36_p9 = por %p35_p10, %p34_p13 }
  0x43   : > { %s158_s10 = sand.u32 1, %s1310_s14   ;;  %s953_s25 = sshll.u32 %s1314_s15, 10 }
  0x44   : > { %s1667_s6 = scalar_select %p1470_p5, 1, 0 }
  0x45   : > { %s908_s11 = sshll.u32 %s158_s10, 6  ;;  %s1483_s24 = scalar_lea.hbm %s1655_s0, %s953_s25 }
  0x46   : > { %s162_s26 = scalar_lea.vmem [#allocation2], %s908_s11  ;;  %p1487_p11 = pnand %p1116_p7, %p36_p9 }
  0x47   : > { %s169_s27 = sshll.u32 %s162_s26, 4  ;;  %s1491_s22 = scalar_lea.sflag [#allocation3], %s158_s10  ;;  %s1485_s27 = int_to_ptr.vmem [resolvable:$true] %s169_s27 }
  0x48   : > { %s1214_s29 = scalar_lea.hbm %s1483_s24, 1024  ;;  %p1216_p0 = pneg %p1487_p11 }
  0x49   : > { %p1215_p12 = scmp.ne.s32.totalorder %s1483_s24, %s1214_s29  ;;  %s1219_s5 = scalar_lea.hbm %s1655_s0, 2048 }
  0x4a   : > { %p1220_p13 = scmp.lt.u32.totalorder %s1483_s24, %s1655_s0  ;;  %p1221_p6 = scmp.lt.u32.totalorder %s1219_s5, %s1214_s29 }
  0x4b   : > { %p1217_p1 = pnand %p1216_p0, %p1215_p12  ;;  %p1223_p3 = scmp.lt.u32.totalorder %s1214_s29, %s1483_s24 }
  0x4c   : > { %p1222_p10 = por %p1221_p6, %p1220_p13 }
  0x4d   : > { %p1218_p2 = pneg %p1217_p1 }
  0x4e   : > { %p1224_p7 = por %p1223_p3, %p1222_p10 }
  0x50   : > { %p1225_p9 = pnand %p1224_p7, %p1218_p2 }
  0x52   : > { %1228 = shalt.err (!%p1225_p9)
}
  0x53   : > { %s1229_s10 = scalar_lea.vmem %s1485_s27, 1024  ;;  %s1320_s17 = smov [#allocation2]  }
  0x54   : > { %p1230_p12 = scmp.ne.s32.totalorder %s1485_s27, %s1229_s10  ;;  %s1234_s21 = sshll.u32 %s1320_s17, 4  ;;  %s1235_s21 = int_to_ptr.vmem [resolvable:$false] %s1234_s21 }
  0x55   : > { %s1236_s26 = scalar_lea.vmem %s1235_s21, 2048  ;;  %p1237_p4 = scmp.lt.s32.totalorder %s1485_s27, %s1235_s21 }
  0x56   : > { %p1232_p1 = pnand %p1230_p12, %p1216_p0  ;;  %p1238_p13 = scmp.lt.s32.totalorder %s1236_s26, %s1229_s10 }
  0x58   : > { %p1233_p5 = pneg %p1232_p1  ;;  %p1239_p6 = por %p1238_p13, %p1237_p4 }
  0x5a   : > { %p1240_p10 = pnand %p1239_p6, %p1233_p5 }
  0x5c   : > { %1243 = shalt.err (!%p1240_p10)
}
  0x5d   : > { %1109 = dma.hbm_to_vmem [thread:$0]  (!%p1487_p11), %s1483_s24, 1024, %s1485_s27, %s1491_s22, %s1318_s7, %s1318_s7, %s1319_s8  }
  0x5e   : > { %181 = sbr.rel (%p1384_p8) target bundleno = 574 (0x23e), region = 32  ;;  %s1525_s29 = sand.u32 (!%p1384_p8), 1, %s1306_s13  }
  0x5f   : > { %s912_s30 = sshll.u32 (!%p1384_p8), %s1525_s29, 6  ;;  %s184_s4 = scalar_lea.sflag (!%p1384_p8), [#allocation3], %s1525_s29 }
  0x60   : > { %s187_s5 = scalar_lea.vmem (!%p1384_p8), [#allocation2], %s912_s30  ;;  %p1669_p4 = scmp.ne.s32.totalorder (!%p1384_p8), %s1662_s18, 0 }
  0x65   : > { %1289 = dma.done.wait (%p1669_p4), %s184_s4, 1024  }
  0x66   : > { %1291 = vsyncadd (%p1669_p4), %s184_s4, 4294966272  ;;  %p1670_p5 = scmp.eq.s32.totalorder %s1365_s16, 0 }
  0x68   : > { %1293 = dma.done.wait (%p1670_p5), [#allocation6], 768   ;;  %p1671_p11 = pmov %p1670_p5 }
  0x69   : > { %vm234_vm0 = vcmask 130048   ;;  %v220_v0 = vld [vmem:[%s187_s5] sm:$0xff]  ;;  %v221_v1 = vld [vmem:[%s187_s5 + $0x8] sm:$0xff]  ;;  %v222_v7 = vld [vmem:[%s187_s5 + $0x10] sm:$0xff]  ;;  %s915_s18 = sshll.u32 %s1525_s29, 7  ;;  %vm780_vm1 = vcmask 261120  }
  0x6a   : > { %1295 = vsyncadd (%p1671_p11), [#allocation6], 4294966528  ;;  %v228_v2 = vld [vmem:[#allocation5] sm:$0xff]  ;;  %v1065_v3 = vpack.c.bf16 %v221_v1, %v220_v0  ;;  %v225_v5 = vld [vmem:[%s187_s5 + $0x28] sm:$0xff]  ;;  %s1570_s20 = scalar_lea.vmem [#allocation8], %s915_s18  ;;  %s954_s7 = sshll.u32 %s1365_s16, 11 }
  0x6b   : > { %1001 = vmatprep.mubr.msk.f32.mxu0 %vm234_vm0, %v228_v2  ;;  %v224_v4 = vld [vmem:[%s187_s5 + $0x20] sm:$0xff]  ;;  %1011 = vmatprep.mubr.msk.f32.mxu1 %vm234_vm0, %v228_v2  ;;  %v223_v8 = vld [vmem:[%s187_s5 + $0x18] sm:$0xff]  ;;  %v226_v9 = vld [vmem:[%s187_s5 + $0x30] sm:$0xff]  ;;  %s811_s8 = sshll.u32 %s1570_s20, 4  ;;  %s1605_s28 = scalar_lea.hbm %s1658_s3, %s954_s7  ;;  %s1607_s8 = int_to_ptr.vmem [resolvable:$true] %s811_s8 }
  0x6c   : > { %v1073_v6 = vpack.c.bf16 %v225_v5, %v224_v4  ;;  %1066 = vmatprep.subr.bf16.mxu0 %v1065_v3  ;;  %v227_v10 = vld [vmem:[%s187_s5 + $0x38] sm:$0xff]  ;;  %v229_v11 = vld [vmem:[#allocation5 + $0x8] sm:$0xff]  ;;  %v1069_v12 = vpack.c.bf16 %v223_v8, %v222_v7  ;;  %v232_v13 = vld [vmem:[#allocation7] sm:$0xff]  ;;  %s798_s16 = scalar_lea.sflag [#allocation4], %s1525_s29  ;;  %s1244_s22 = scalar_lea.vmem %s1607_s8, 2048 }
  0x6d   : > { %1068 = vmatpush3.bf16.msra.mxu0 %v1065_v3  ;;  %v233_v14 = vld [vmem:[#allocation7 + $0x8] sm:$0xff]  ;;  %v230_v15 = vld [vmem:[#allocation5 + $0x10] sm:$0xff]  ;;  %v1077_v16 = vpack.c.bf16 %v227_v10, %v226_v9  ;;  %v231_v18 = vld [vmem:[#allocation5 + $0x18] sm:$0xff]  ;;  %p1245_p8 = scmp.ne.s32.totalorder %s1607_s8, %s1244_s22  ;;  %p1672_p0 = scmp.ne.s32.totalorder %s1667_s6, 0 }
  0x6e   : > { %1074 = vmatprep.subr.bf16.mxu0 %v1073_v6  ;;  %v1081_v17 = vpack.c.bf16 %v233_v14, %v232_v13  ;;  %1070 = vmatprep.subr.bf16.mxu1 %v1069_v12  ;;  %s1321_s11 = smov [#allocation8]  }
  0x6f   : > { %1072 = vmatpush3.bf16.msra.mxu1 %v1069_v12  ;;  %p1246_p2 = pnand %p1245_p8, %p1672_p0  ;;  %s1248_s25 = sshll.u32 %s1321_s11, 4  ;;  %s1249_s25 = int_to_ptr.vmem [resolvable:$false] %s1248_s25 }
  0x70   : > { %1002 = vmatmul.mubr.msk.f32.vlgmr.msra.gmra.mrb[0].mxu0 %vm234_vm0, %v229_v11  ;;  %1078 = vmatprep.subr.bf16.mxu1 %v1077_v16  ;;  %s1250_s10 = scalar_lea.vmem %s1249_s25, 4096  ;;  %p1251_p7 = scmp.lt.s32.totalorder %s1607_s8, %s1249_s25 }
  0x71   : > { %1076 = vmatpush3.bf16.msra.mxu0 %v1073_v6  ;;  %1004 = vmatprep.mubr.msk.f32.mxu0 %vm234_vm0, %v230_v15  ;;  %p1247_p3 = pneg %p1246_p2  ;;  %p1252_p9 = scmp.lt.s32.totalorder %s1250_s10, %s1244_s22 }
  0x72   : > { %1082 = vmatprep.subr.bf16.mxu0 %v1081_v17  ;;  %1012 = vmatmul.mubr.msk.f32.vlgmr.msra.gmra.mrb[0].mxu1 %vm234_vm0, %v229_v11 }
  0x73   : > { %1080 = vmatpush3.bf16.msra.mxu1 %v1077_v16  ;;  %1014 = vmatprep.mubr.msk.f32.mxu1 %vm234_vm0, %v230_v15  ;;  %p1253_p12 = por %p1252_p9, %p1251_p7 }
  0x74   : > { %1005 = vmatmul.mubr.msk.f32.gmra.mrb[2].mxu0 %vm234_vm0, %v231_v18  ;;  %1085 = vmatprep.subr.bf16.mxu1 %v1081_v17 }
  0x75   : > { %1021 = vmatprep.mubr.msk.f32.mxu0 %vm234_vm0, %v228_v2  ;;  %p1254_p1 = pnand %p1253_p12, %p1247_p3 }
  0x76   : > { %1015 = vmatmul.mubr.msk.f32.gmra.mrb[2].mxu1 %vm234_vm0, %v231_v18 }
  0x77   : > { %1031 = vmatprep.mubr.msk.f32.mxu1 %vm234_vm0, %v228_v2 }
  0x78   : > { %1022 = vmatmul.mubr.msk.f32.vlgmr.msra.gmra.mrb[4].mxu0 %vm234_vm0, %v229_v11 }
  0x79   : > { %1024 = vmatprep.mubr.msk.f32.mxu0 %vm234_vm0, %v230_v15  ;;  %1084 = vmatpush3.bf16.msra.mxu0 %v1081_v17 }
  0x7a   : > { %1032 = vmatmul.mubr.msk.f32.vlgmr.msra.gmra.mrb[4].mxu1 %vm234_vm0, %v229_v11 }
  0x7b   : > { %1034 = vmatprep.mubr.msk.f32.mxu1 %vm234_vm0, %v230_v15  ;;  %1086 = vmatpush3.bf16.msra.mxu1 %v1081_v17 }
  0x7c   : > { %1025 = vmatmul.mubr.msk.f32.gmra.mrb[6].mxu0 %vm234_vm0, %v231_v18 }
  0x7e   : > { %1035 = vmatmul.mubr.msk.f32.gmra.mrb[6].mxu1 %vm234_vm0, %v231_v18 }
 0x143   : > { %v1003_v19 = vpop.f32.mrb[0].mxu0 }
 0x144   : > { %v313_v20 = vpop.f32.mrb[1].mxu0 }
 0x145   : > { %1041 = vmatprep.mubr.msk.f32.mxu0 %vm234_vm0, %v313_v20  ;;  %v1013_v21 = vpop.f32.mrb[0].mxu1 }
 0x146   : > { %1042 = vmatmul.mubr.msk.f32.vlgmr.msra.gmra.mrb[8].mxu0 %vm234_vm0, %v1003_v19  ;;  %v398_v23 = vpop.f32.mrb[1].mxu1 }
 0x147   : > { %v1006_v22 = vpop.f32.mrb[2].mxu0 }
 0x148   : > { %v323_v24 = vpop.f32.mrb[3].mxu0 }
 0x149   : > { %1044 = vmatprep.mubr.msk.f32.mxu0 %vm234_vm0, %v323_v24  ;;  %v1016_v25 = vpop.f32.mrb[2].mxu1 }
 0x14a   : > { %1045 = vmatmul.mubr.msk.f32.gmra.mrb[10].mxu0 %vm234_vm0, %v1006_v22  ;;  %v408_v27 = vpop.f32.mrb[3].mxu1 }
 0x14b   : > { %v1023_v26 = vpop.f32.mrb[4].mxu0  ;;  %1047 = vmatprep.mubr.msk.f32.mxu0 %vm234_vm0, %v398_v23 }
 0x14c   : > { %v483_v28 = vpop.f32.mrb[5].mxu0 }
 0x14d   : > { %1053 = vmatprep.mubr.msk.f32.mxu1 %vm234_vm0, %v483_v28  ;;  %v1033_v29 = vpop.f32.mrb[4].mxu1 }
 0x14e   : > { %1048 = vmatmul.mubr.msk.f32.gmra.mrb[12].mxu0 %vm234_vm0, %v1013_v21  ;;  %1054 = vmatmul.mubr.msk.f32.vlgmr.msra.gmra.mrb[8].mxu1 %vm234_vm0, %v1023_v26  ;;  %v568_v31 = vpop.f32.mrb[5].mxu1 }
 0x14f   : > { %v1026_v30 = vpop.f32.mrb[6].mxu0  ;;  %1050 = vmatprep.mubr.msk.f32.mxu0 %vm234_vm0, %v408_v27 }
 0x150   : > { %v493_v32 = vpop.f32.mrb[7].mxu0 }
 0x151   : > { %1056 = vmatprep.mubr.msk.f32.mxu1 %vm234_vm0, %v493_v32  ;;  %v1036_v33 = vpop.f32.mrb[6].mxu1 }
 0x152   : > { %1051 = vmatmul.mubr.msk.f32.gmra.mrb[14].mxu0 %vm234_vm0, %v1016_v25  ;;  %1057 = vmatmul.mubr.msk.f32.gmra.mrb[10].mxu1 %vm234_vm0, %v1026_v30  ;;  %v578_v34 = vpop.f32.mrb[7].mxu1 }
 0x153   : > { %1059 = vmatprep.mubr.msk.f32.mxu1 %vm234_vm0, %v568_v31 }
 0x156   : > { %1060 = vmatmul.mubr.msk.f32.gmra.mrb[12].mxu1 %vm234_vm0, %v1033_v29 }
 0x157   : > { %1062 = vmatprep.mubr.msk.f32.mxu1 %vm234_vm0, %v578_v34 }
 0x15a   : > { %1063 = vmatmul.mubr.msk.f32.gmra.mrb[14].mxu1 %vm234_vm0, %v1036_v33 }
 0x219   : > { %v1043_v35 = vpop.f32.mrb[8].mxu0 }
 0x21a   : > { %782 = vst.msk [vmem:[%s1570_s20 + $0x8] sm:$0xff] %vm780_vm1, %v1043_v35  ;;  %v701_v36 = vpop.f32.mrb[9].mxu0 }
 0x21b   : > { %781 = vst.msk [vmem:[%s1570_s20] sm:$0xff] %vm780_vm1, %v701_v36 }
 0x21d   : > { %v1046_v37 = vpop.f32.mrb[10].mxu0 }
 0x21e   : > { %784 = vst.msk [vmem:[%s1570_s20 + $0x18] sm:$0xff] %vm780_vm1, %v1046_v37  ;;  %v711_v38 = vpop.f32.mrb[11].mxu0 }
 0x21f   : > { %783 = vst.msk [vmem:[%s1570_s20 + $0x10] sm:$0xff] %vm780_vm1, %v711_v38 }
 0x221   : > { %v1049_v39 = vpop.f32.mrb[12].mxu0  ;;  %v1055_v40 = vpop.f32.mrb[8].mxu1 }
 0x222   : > { %786 = vst.msk [vmem:[%s1570_s20 + $0x28] sm:$0xff] %vm780_vm1, %v1049_v39  ;;  %790 = vst.msk [vmem:[%s1570_s20 + $0x48] sm:$0xff] %vm780_vm1, %v1055_v40  ;;  %v721_v41 = vpop.f32.mrb[13].mxu0  ;;  %v741_v42 = vpop.f32.mrb[9].mxu1 }
 0x223   : > { %785 = vst.msk [vmem:[%s1570_s20 + $0x20] sm:$0xff] %vm780_vm1, %v721_v41  ;;  %789 = vst.msk [vmem:[%s1570_s20 + $0x40] sm:$0xff] %vm780_vm1, %v741_v42 }
 0x225   : > { %v1052_v43 = vpop.f32.mrb[14].mxu0  ;;  %v1058_v44 = vpop.f32.mrb[10].mxu1 }
 0x226   : > { %788 = vst.msk [vmem:[%s1570_s20 + $0x38] sm:$0xff] %vm780_vm1, %v1052_v43  ;;  %792 = vst.msk [vmem:[%s1570_s20 + $0x58] sm:$0xff] %vm780_vm1, %v1058_v44  ;;  %v731_v45 = vpop.f32.mrb[15].mxu0  ;;  %v751_v46 = vpop.f32.mrb[11].mxu1 }
 0x227   : > { %787 = vst.msk [vmem:[%s1570_s20 + $0x30] sm:$0xff] %vm780_vm1, %v731_v45  ;;  %791 = vst.msk [vmem:[%s1570_s20 + $0x50] sm:$0xff] %vm780_vm1, %v751_v46 }
 0x229   : > { %v1061_v47 = vpop.f32.mrb[12].mxu1 }
 0x22a   : > { %794 = vst.msk [vmem:[%s1570_s20 + $0x68] sm:$0xff] %vm780_vm1, %v1061_v47  ;;  %v761_v48 = vpop.f32.mrb[13].mxu1 }
 0x22b   : > { %793 = vst.msk [vmem:[%s1570_s20 + $0x60] sm:$0xff] %vm780_vm1, %v761_v48 }
 0x22d   : > { %v1064_v49 = vpop.f32.mrb[14].mxu1 }
 0x22e   : > { %796 = vst.msk [vmem:[%s1570_s20 + $0x78] sm:$0xff] %vm780_vm1, %v1064_v49  ;;  %v771_v50 = vpop.f32.mrb[15].mxu1 }
 0x22f   : > { %795 = vst.msk [vmem:[%s1570_s20 + $0x70] sm:$0xff] %vm780_vm1, %v771_v50 }
 0x230   : > { %1257 = shalt.err (!%p1254_p1)
}
 0x231   : > { %s1258_s17 = scalar_lea.hbm %s1605_s28, 2048  ;;  %s1262_s30 = scalar_lea.hbm %s1658_s3, 4096 }
 0x232   : > { %p1259_p13 = scmp.ne.s32.totalorder %s1605_s28, %s1258_s17  ;;  %p1263_p4 = scmp.lt.u32.totalorder %s1605_s28, %s1658_s3 }
 0x233   : > { %p1264_p5 = scmp.lt.u32.totalorder %s1262_s30, %s1258_s17  ;;  %p1266_p8 = scmp.lt.u32.totalorder %s1258_s17, %s1605_s28 }
 0x234   : > { %p1260_p6 = pnand %p1259_p13, %p1672_p0 }
 0x235   : > { %p1265_p11 = por %p1264_p5, %p1263_p4 }
 0x236   : > { %p1261_p10 = pneg %p1260_p6 }
 0x237   : > { %p1267_p2 = por %p1266_p8, %p1265_p11 }
 0x239   : > { %p1268_p3 = pnand %p1267_p2, %p1261_p10 }
 0x23b   : > { %1271 = shalt.err (!%p1268_p3)
}
 0x23c   : > { %s1322_s18 = smov 128   ;;  %s1323_s20 = smov 8  }
 0x23d   : > { %1097 = dma.vmem_to_hbm [thread:$0]  (%p1672_p0), %s1607_s8, 2048, %s1605_s28, %s798_s16, %s1322_s18, %s1322_s18, %s1323_s20  }
 0x23e PF: > { %s826_s7 = sand.u32 1, %s1302_s12   ;;  %p1673_p7 = scmp.ne.s32.totalorder %s1663_s19, 0 }
 0x23f   : > { %p1674_p9 = scmp.ge.s32.totalorder %s1314_s15, 2  ;;  %s827_s24 = scalar_lea.sflag [#allocation4], %s826_s7 }
 0x241   : > { %p1111_p12 = pnand %p1674_p9, %p1673_p7 }
 0x243   : > { %1297 = dma.done.wait (!%p1111_p12), %s827_s24, 2048  }
 0x244   : > { %1299 = vsyncadd (!%p1111_p12), %s827_s24, 4294965248  ;;  %p17_p1 = scmp.ge.s32.totalorder %s1460_s23, 4   ;;  %s1675_s12 = smov %s1306_s13 }
 0x245   : > { %s1676_s13 = smov %s1310_s14  ;;  %s1677_s14 = smov %s1476_s9 }
 0x246   : > { %s1678_s15 = smov %s1460_s23  ;;  %19 = sbr.rel (!%p17_p1) target bundleno = 6 (0x6), region = 85 }
 0x24d   :  { %832 = vsyncpa [#allocation3], 1 }
 0x24e   :  { %834 = vsyncpa [#allocation3 + $0x1], 1 }
 0x24f   :  { %835 = vsyncpa [#allocation6], 1 }
 0x250   :  { %836 = vsyncpa [#allocation4], 1 }
 0x251   :  { %838 = vsyncpa [#allocation4 + $0x1], 1 }

</bundles_post_ra>
